<compile_context>
chip_gen: v7x
topology: tpu7x:2x2x1
jax: 0.10.0
libtpu: 0.0.40
codegen_flags: <defaults>
</compile_context>

<pallas_src>
import functools

import jax
import jax.numpy as jnp
from jax.experimental import pallas as pl
from jax.experimental.pallas import tpu as pltpu

_SUBLANE = 8                      # f32 sublane group
_LANE = 128                       # lane width
_TM_MAX = 512                     # max batch tile (>=512 ~ HBM roofline)
_VMEM_BUDGET = 40 * 1024 * 1024   # resident-set budget (safe on v7x 64 MiB)
_VMEM_LIMIT = 48 * 1024 * 1024    # scoped VMEM limit (<= physical on all gens)


def _round_up(n, m):
    return ((n + m - 1) // m) * m


def _apply_activation(y, name):
    """Mirror of GetActivation() in the PyTorch reference (case-sensitive)."""
    if name == "relu":
        return jnp.maximum(y, 0.0)
    if name == "leakyrelu":
        return jnp.where(y >= 0.0, y, 0.01 * y)      # nn.LeakyReLU default slope
    if name == "Sigmoid":
        return 1.0 / (1.0 + jnp.exp(-y))              # exact (no approx recip)
    if name == "Tanh":
        return jnp.tanh(y)
    if name == "Identity":
        return y
    return jnp.maximum(y, 0.0)                        # reference default: ReLU


def _fused_mlp_kernel(*refs, activations):
    """refs = (x, w1, b1, w2, b2, ..., wN, bN, out).

    x/out are (TM, D*) batch tiles; weights/biases are whole (padded) arrays,
    VMEM-resident across all grid steps. Intermediates stay as values; only the
    final lane-dense output tile is stored.
    """
    x_ref = refs[0]
    o_ref = refs[-1]
    wb = refs[1:-1]

    h = x_ref[...]                                    # (TM, Din_pad) f32
    for i, act in enumerate(activations):
        w = wb[2 * i][...]                            # (Din_pad, Dout_pad) bf16
        b = wb[2 * i + 1][...]                        # (1, Dout_pad) f32
        y = jnp.dot(h.astype(w.dtype), w,
                    preferred_element_type=jnp.float32) + b
        h = _apply_activation(y, act)
    o_ref[...] = h.astype(o_ref.dtype)


def fused_mlp_forward(x, flat_params, activations, dout_pad, tm):
    """x: [B_eff, Din_pad] f32, flat_params: [w1, b1, ...] -> [B_eff, dout_pad]."""
    b_eff, din_pad = x.shape
    grid = (pl.cdiv(b_eff, tm),)

    in_specs = [pl.BlockSpec((tm, din_pad), lambda i: (i, 0))]   # pipelined x
    for p in flat_params:
        # Constant block index -> fetched once, stays VMEM-resident.
        in_specs.append(pl.BlockSpec(p.shape, lambda i: (0, 0)))
    out_spec = pl.BlockSpec((tm, dout_pad), lambda i: (i, 0))

    kernel = functools.partial(_fused_mlp_kernel, activations=tuple(activations))
    return pl.pallas_call(
        kernel,
        out_shape=jax.ShapeDtypeStruct((b_eff, dout_pad), jnp.float32),
        grid=grid,
        in_specs=in_specs,
        out_specs=out_spec,
        compiler_params=pltpu.CompilerParams(
            dimension_semantics=("parallel",),        # megacore sharding on v7x
            vmem_limit_bytes=_VMEM_LIMIT,
        ),
    )(x, *flat_params)


# ----------------------------------------------------------------------------
# Parameter init (deterministic, mimics nn.Linear defaults), pre-padded once.
# Weights are stored bf16 (halves DMA / VMEM); biases stay f32.
# ----------------------------------------------------------------------------
def _init_linear_padded(key, d_in, d_out, d_in_pad, d_out_pad):
    kw, kb = jax.random.split(key)
    bound = 1.0 / float(d_in) ** 0.5
    w = jax.random.uniform(kw, (d_in, d_out), jnp.float32, -bound, bound)
    b = jax.random.uniform(kb, (d_out,), jnp.float32, -bound, bound)
    w_pad = jnp.zeros((d_in_pad, d_out_pad), jnp.float32).at[:d_in, :d_out].set(w)
    b_pad = jnp.zeros((1, d_out_pad), jnp.float32).at[0, :d_out].set(b)
    return w_pad.astype(jnp.bfloat16), b_pad


def _choose_tm(din_pad, dims_pad, param_bytes,
               budget=_VMEM_BUDGET, tm_max=_TM_MAX):
    """Largest batch tile whose resident set fits the VMEM budget."""
    max_w = max([din_pad] + list(dims_pad))
    dout_pad = dims_pad[-1]
    # 2x double-buffered x tile + 2x out tile + f32/bf16 working intermediates.
    per_row = 2 * 4 * din_pad + 2 * 4 * dout_pad + 6 * max_w
    fixed = 2 * param_bytes                          # conservative (x2 buffering)
    tm = tm_max
    while tm > _SUBLANE and fixed + tm * per_row > budget:
        tm //= 2
    return max(tm, _SUBLANE)


# ----------------------------------------------------------------------------
# MLP: mirrors the PyTorch reference with use_dropout=use_batch_norm=False.
# `use_softmax` is never applied in the reference forward(), so it is ignored.
# ----------------------------------------------------------------------------
class MLP:
    def __init__(self, in_features, out_features, hidden_layers, actv_func, key):
        self.in_features = in_features
        self.out_features = out_features
        self.din_pad = _round_up(in_features, _LANE)

        dims = [in_features]
        acts = []
        for i, h in enumerate(hidden_layers):
            dims.append(h)
            acts.append(actv_func[i])
        if dims[-1] != out_features:                 # matches reference build_()
            dims.append(out_features)
            acts.append("Identity")                  # trailing Linear, no act

        self.activations = acts
        self.flat_params = []
        keys = jax.random.split(key, max(len(acts), 1))
        d_in_pad = self.din_pad
        dims_pad = []
        for i in range(len(acts)):
            d_in, d_out = dims[i], dims[i + 1]
            d_out_pad = _round_up(d_out, _LANE)
            w, b = _init_linear_padded(keys[i], d_in, d_out, d_in_pad, d_out_pad)
            self.flat_params += [w, b]
            dims_pad.append(d_out_pad)
            d_in_pad = d_out_pad
        self.dout_pad = d_in_pad
        self.real_dout = dims[-1]
        if acts:
            param_bytes = sum(int(p.size) * p.dtype.itemsize
                              for p in self.flat_params)
            self.tm_budget = _choose_tm(self.din_pad, dims_pad, param_bytes)
        else:
            self.tm_budget = _SUBLANE

    def __call__(self, x):
        # torch.flatten(x.float(), start_dim=1)
        x = x.astype(jnp.float32).reshape(x.shape[0], -1)
        B, Din = x.shape
        if not self.activations:                     # degenerate: no layers
            return x
        pad_rows = max(_SUBLANE - B, 0)              # only for sub-sublane batch
        pad_cols = self.din_pad - Din
        if pad_rows or pad_cols:
            x = jnp.pad(x, ((0, pad_rows), (0, pad_cols)))
        b_eff = x.shape[0]
        tm = min(self.tm_budget, _round_up(b_eff, _SUBLANE))
        out = fused_mlp_forward(x, self.flat_params, self.activations,
                                self.dout_pad, tm)
        return out[:B, :self.real_dout]


if __name__ == "__main__":
    key = jax.random.PRNGKey(0)
    k_x, k_p = jax.random.split(key)

    # Input: NCHW [B=2, C=4, H=16, W=16] -> flattened in_features = 1024
    x = jax.random.normal(k_x, (2, 4, 16, 16), jnp.float32)

    in_features = 4 * 16 * 16
    hidden_layers = [32, 32]
    actv_func = ["relu", "Tanh"]
    out_features = 8

    mlp = MLP(in_features, out_features, hidden_layers, actv_func, k_p)
    y = mlp(x)
    y = jax.block_until_ready(y)
    assert y.shape == (2, out_features) and y.dtype == jnp.float32
    assert bool(jnp.all(jnp.isfinite(y)))
    print("KERNEL_OK")
</pallas_src>

<mosaic_0001>
module attributes {stable_mosaic.version = 11 : i64} {
  func.func @_fused_mlp_kernel(%arg0: i32, %arg1: memref<8x1024xf32, #tpu.memory_space<vmem>>, %arg2: memref<1024x128xbf16, #tpu.memory_space<vmem>>, %arg3: memref<1x128xf32, #tpu.memory_space<vmem>>, %arg4: memref<128x128xbf16, #tpu.memory_space<vmem>>, %arg5: memref<1x128xf32, #tpu.memory_space<vmem>>, %arg6: memref<128x128xbf16, #tpu.memory_space<vmem>>, %arg7: memref<1x128xf32, #tpu.memory_space<vmem>>, %arg8: memref<8x128xf32, #tpu.memory_space<vmem>>) attributes {dimension_semantics = [#tpu.dimension_semantics<parallel>], iteration_bounds = array<i64: 1>, scalar_prefetch = 0 : i64, scratch_operands = 0 : i64, tpu.core_type = #tpu.core_type<tc>, window_params = [{transform_indices = @transform_0, window_bounds = array<i64: 8, 1024>}, {pipeline_mode = #tpu.pipeline_mode<synchronous>, transform_indices = @transform_1, window_bounds = array<i64: 1024, 128>}, {pipeline_mode = #tpu.pipeline_mode<synchronous>, transform_indices = @transform_2, window_bounds = array<i64: 1, 128>}, {pipeline_mode = #tpu.pipeline_mode<synchronous>, transform_indices = @transform_3, window_bounds = array<i64: 128, 128>}, {pipeline_mode = #tpu.pipeline_mode<synchronous>, transform_indices = @transform_4, window_bounds = array<i64: 1, 128>}, {pipeline_mode = #tpu.pipeline_mode<synchronous>, transform_indices = @transform_5, window_bounds = array<i64: 128, 128>}, {pipeline_mode = #tpu.pipeline_mode<synchronous>, transform_indices = @transform_6, window_bounds = array<i64: 1, 128>}, {transform_indices = @transform_7, window_bounds = array<i64: 8, 128>}]} {
    %c0 = arith.constant 0 : index
    %c0_0 = arith.constant 0 : index
    %0 = vector.load %arg1[%c0, %c0_0] : memref<8x1024xf32, #tpu.memory_space<vmem>>, vector<8x1024xf32>
    %c0_1 = arith.constant 0 : index
    %c0_2 = arith.constant 0 : index
    %1 = vector.load %arg2[%c0_1, %c0_2] : memref<1024x128xbf16, #tpu.memory_space<vmem>>, vector<1024x128xbf16>
    %c0_3 = arith.constant 0 : index
    %c0_4 = arith.constant 0 : index
    %2 = vector.load %arg3[%c0_3, %c0_4] : memref<1x128xf32, #tpu.memory_space<vmem>>, vector<1x128xf32>
    %3 = arith.truncf %0 : vector<8x1024xf32> to vector<8x1024xbf16>
    %cst = arith.constant dense<0.000000e+00> : vector<8x128xf32>
    %4 = tpu.matmul %3, %1, %cst {dimension_numbers = #tpu.dot_dimension_numbers<[1], [0], [0], [1], [0, 0, 1, 1], [], []>} : vector<8x1024xbf16>, vector<1024x128xbf16>, vector<8x128xf32> -> vector<8x128xf32>
    %5 = vector.broadcast %2 : vector<1x128xf32> to vector<8x128xf32>
    %6 = arith.addf %4, %5 : vector<8x128xf32>
    %cst_5 = arith.constant 0.000000e+00 : f32
    %7 = vector.broadcast %cst_5 : f32 to vector<8x128xf32>
    %8 = arith.maximumf %6, %7 : vector<8x128xf32>
    %c0_6 = arith.constant 0 : index
    %c0_7 = arith.constant 0 : index
    %9 = vector.load %arg4[%c0_6, %c0_7] : memref<128x128xbf16, #tpu.memory_space<vmem>>, vector<128x128xbf16>
    %c0_8 = arith.constant 0 : index
    %c0_9 = arith.constant 0 : index
    %10 = vector.load %arg5[%c0_8, %c0_9] : memref<1x128xf32, #tpu.memory_space<vmem>>, vector<1x128xf32>
    %11 = arith.truncf %8 : vector<8x128xf32> to vector<8x128xbf16>
    %cst_10 = arith.constant dense<0.000000e+00> : vector<8x128xf32>
    %12 = tpu.matmul %11, %9, %cst_10 {dimension_numbers = #tpu.dot_dimension_numbers<[1], [0], [0], [1], [0, 0, 1, 1], [], []>} : vector<8x128xbf16>, vector<128x128xbf16>, vector<8x128xf32> -> vector<8x128xf32>
    %13 = vector.broadcast %10 : vector<1x128xf32> to vector<8x128xf32>
    %14 = arith.addf %12, %13 : vector<8x128xf32>
    %15 = math.tanh %14 : vector<8x128xf32>
    %c0_11 = arith.constant 0 : index
    %c0_12 = arith.constant 0 : index
    %16 = vector.load %arg6[%c0_11, %c0_12] : memref<128x128xbf16, #tpu.memory_space<vmem>>, vector<128x128xbf16>
    %c0_13 = arith.constant 0 : index
    %c0_14 = arith.constant 0 : index
    %17 = vector.load %arg7[%c0_13, %c0_14] : memref<1x128xf32, #tpu.memory_space<vmem>>, vector<1x128xf32>
    %18 = arith.truncf %15 : vector<8x128xf32> to vector<8x128xbf16>
    %cst_15 = arith.constant dense<0.000000e+00> : vector<8x128xf32>
    %19 = tpu.matmul %18, %16, %cst_15 {dimension_numbers = #tpu.dot_dimension_numbers<[1], [0], [0], [1], [0, 0, 1, 1], [], []>} : vector<8x128xbf16>, vector<128x128xbf16>, vector<8x128xf32> -> vector<8x128xf32>
    %20 = vector.broadcast %17 : vector<1x128xf32> to vector<8x128xf32>
    %21 = arith.addf %19, %20 : vector<8x128xf32>
    %c0_16 = arith.constant 0 : index
    %c0_17 = arith.constant 0 : index
    %22 = vector.load %arg8[%c0_16, %c0_17] : memref<8x128xf32, #tpu.memory_space<vmem>>, vector<8x128xf32>
    tpu.vector_store %arg8[%c0_16, %c0_17], %21 {strides = array<i32>} : memref<8x128xf32, #tpu.memory_space<vmem>>, vector<8x128xf32>,
    return
  }
  func.func @transform_0(%arg0: i32) -> (i32, i32) {
    %c0_i32 = arith.constant 0 : i32
    %c0_i32_0 = arith.constant 0 : i32
    return %arg0, %c0_i32 : i32, i32
  }
  func.func @transform_1(%arg0: i32) -> (i32, i32) {
    %c0_i32 = arith.constant 0 : i32
    %c0_i32_0 = arith.constant 0 : i32
    %c0_i32_1 = arith.constant 0 : i32
    return %c0_i32, %c0_i32_0 : i32, i32
  }
  func.func @transform_2(%arg0: i32) -> (i32, i32) {
    %c0_i32 = arith.constant 0 : i32
    %c0_i32_0 = arith.constant 0 : i32
    %c0_i32_1 = arith.constant 0 : i32
    return %c0_i32, %c0_i32_0 : i32, i32
  }
  func.func @transform_3(%arg0: i32) -> (i32, i32) {
    %c0_i32 = arith.constant 0 : i32
    %c0_i32_0 = arith.constant 0 : i32
    %c0_i32_1 = arith.constant 0 : i32
    return %c0_i32, %c0_i32_0 : i32, i32
  }
  func.func @transform_4(%arg0: i32) -> (i32, i32) {
    %c0_i32 = arith.constant 0 : i32
    %c0_i32_0 = arith.constant 0 : i32
    %c0_i32_1 = arith.constant 0 : i32
    return %c0_i32, %c0_i32_0 : i32, i32
  }
  func.func @transform_5(%arg0: i32) -> (i32, i32) {
    %c0_i32 = arith.constant 0 : i32
    %c0_i32_0 = arith.constant 0 : i32
    %c0_i32_1 = arith.constant 0 : i32
    return %c0_i32, %c0_i32_0 : i32, i32
  }
  func.func @transform_6(%arg0: i32) -> (i32, i32) {
    %c0_i32 = arith.constant 0 : i32
    %c0_i32_0 = arith.constant 0 : i32
    %c0_i32_1 = arith.constant 0 : i32
    return %c0_i32, %c0_i32_0 : i32, i32
  }
  func.func @transform_7(%arg0: i32) -> (i32, i32) {
    %c0_i32 = arith.constant 0 : i32
    %c0_i32_0 = arith.constant 0 : i32
    return %arg0, %c0_i32 : i32, i32
  }
}

</mosaic_0001>

<bundles_post_ra>
// kernel: tpu_custom_call.1
= control target key start
LH: loop header
LB: loop body
LE: loop exit
PB: predicated region body
PF: predicated region fallthrough
CT: control target
= control target key end

     0   :  { %12 = vsyncpa [#allocation3], 0  ;;  %s1603_s0 = inlined_call_operand.hbm [shape: f32[8,1024], index: 0, kind: input, shape index: {}]   ;;  %s1604_s1 = inlined_call_operand.hbm [shape: bf16[1024,128], index: 1, kind: input, shape index: {}]   ;;  %s1605_s2 = inlined_call_operand.vmem [shape: f32[1,128], index: 2, kind: input, shape index: {}]   ;;  %s1606_s3 = inlined_call_operand.hbm [shape: bf16[128,128], index: 3, kind: input, shape index: {}]   ;;  %s1607_s4 = inlined_call_operand.vmem [shape: f32[1,128], index: 4, kind: input, shape index: {}]   ;;  %s1608_s5 = inlined_call_operand.hbm [shape: bf16[128,128], index: 5, kind: input, shape index: {}]   ;;  %s1609_s6 = inlined_call_operand.vmem [shape: f32[1,128], index: 6, kind: input, shape index: {}]   ;;  %s1610_s7 = inlined_call_operand.hbm [shape: f32[8,128], index: 7, kind: output, shape index: {}]  }
   0x1   :  { %13 = vsyncpa [#allocation6], 0 }
   0x2   :  { %14 = vsyncpa [#allocation9], 0 }
   0x3   :  { %15 = vsyncpa [#allocation4], 0  ;;  %s1458_s24 = smov [#allocation5]   ;;  %s1340_s28 = scalar_lea.hbm %s1604_s1, 8192 }
   0x4   :  { %s31_s25 = sshll.u32 %s1458_s24, 4  ;;  %p1341_p0 = scmp.ne.s32.totalorder %s1604_s1, %s1340_s28  ;;  %s32_s25 = int_to_ptr.vmem [resolvable:$true] %s31_s25 }
   0x5   :  { %p1344_p1 = scmp.lt.u32.totalorder %s1340_s28, %s1604_s1 }
   0x7   :  { %p1346_p2 = pnand %p1344_p1, %p1341_p0 }
   0x9   :  { %1349 = shalt.err (!%p1346_p2)
}
   0xa   :  { %s1350_s10 = scalar_lea.vmem %s32_s25, 8192  ;;  %p1355_p4 = scmp.lt.s32.totalorder %s32_s25, %s32_s25 }
   0xb   :  { %p1351_p3 = scmp.ne.s32.totalorder %s32_s25, %s1350_s10  ;;  %p1356_p5 = scmp.lt.s32.totalorder %s1350_s10, %s1350_s10 }
   0xd   :  { %p1357_p6 = por %p1356_p5, %p1355_p4 }
   0xf   :  { %p1358_p7 = pnand %p1357_p6, %p1351_p3 }
  0x11   :  { %1361 = shalt.err (!%p1358_p7)
}
  0x12   :  { %s1459_s11 = smov 64   ;;  %s1460_s12 = smov 4  }
  0x13   :  { %37 = dma.hbm_to_vmem [thread:$0]  %s1604_s1, 8192, %s32_s25, [#allocation6], %s1459_s11, %s1459_s11, %s1460_s12  }
  0x14   :  { %s1461_s15 = smov [#allocation2]   ;;  %s1462_s17 = smov [#allocation7]  }
  0x15   :  { %s22_s16 = sshll.u32 %s1461_s15, 4  ;;  %s45_s18 = sshll.u32 %s1462_s17, 4  ;;  %s23_s16 = int_to_ptr.vmem [resolvable:$true] %s22_s16  ;;  %s46_s18 = int_to_ptr.vmem [resolvable:$true] %s45_s18 }
  0x16   :  { %s1362_s21 = scalar_lea.hbm %s1603_s0, 1024 }
  0x17   :  { %p1363_p8 = scmp.ne.s32.totalorder %s1603_s0, %s1362_s21  ;;  %p1366_p9 = scmp.lt.u32.totalorder %s1362_s21, %s1603_s0 }
  0x19   :  { %p1368_p10 = pnand %p1366_p9, %p1363_p8 }
  0x1b   :  { %1371 = shalt.err (!%p1368_p10)
}
  0x1c   :  { %s1372_s1 = scalar_lea.vmem %s23_s16, 1024  ;;  %p1377_p12 = scmp.lt.s32.totalorder %s23_s16, %s23_s16 }
  0x1d   :  { %p1373_p11 = scmp.ne.s32.totalorder %s23_s16, %s1372_s1  ;;  %p1378_p13 = scmp.lt.s32.totalorder %s1372_s1, %s1372_s1 }
  0x1f   :  { %p1379_p0 = por %p1378_p13, %p1377_p12 }
  0x21   :  { %p1380_p1 = pnand %p1379_p0, %p1373_p11 }
  0x23   :  { %1383 = shalt.err (!%p1380_p1)
}
  0x24   :  { %25 = dma.hbm_to_vmem [thread:$0]  %s1603_s0, 1024, %s23_s16, [#allocation3]  }
  0x25   :  { %s1384_s30 = scalar_lea.hbm %s1606_s3, 1024 }
  0x26   :  { %p1385_p2 = scmp.ne.s32.totalorder %s1606_s3, %s1384_s30  ;;  %p1388_p3 = scmp.lt.u32.totalorder %s1384_s30, %s1606_s3 }
  0x28   :  { %p1390_p4 = pnand %p1388_p3, %p1385_p2 }
  0x2a   :  { %1393 = shalt.err (!%p1390_p4)
}
  0x2b   :  { %s1394_s14 = scalar_lea.vmem %s46_s18, 1024  ;;  %p1399_p6 = scmp.lt.s32.totalorder %s46_s18, %s46_s18 }
  0x2c   :  { %p1395_p5 = scmp.ne.s32.totalorder %s46_s18, %s1394_s14  ;;  %p1400_p7 = scmp.lt.s32.totalorder %s1394_s14, %s1394_s14 }
  0x2e   :  { %p1401_p8 = por %p1400_p7, %p1399_p6 }
  0x30   :  { %p1402_p9 = pnand %p1401_p8, %p1395_p5 }
  0x32   :  { %1405 = shalt.err (!%p1402_p9)
}
  0x33   :  { %51 = dma.hbm_to_vmem [thread:$0]  %s1606_s3, 1024, %s46_s18, [#allocation6], %s1459_s11, %s1459_s11, %s1460_s12  }
  0x34   :  { %s1463_s16 = smov [#allocation8]   ;;  %s1406_s21 = scalar_lea.hbm %s1608_s5, 1024 }
  0x35   :  { %s59_s17 = sshll.u32 %s1463_s16, 4  ;;  %p1407_p10 = scmp.ne.s32.totalorder %s1608_s5, %s1406_s21  ;;  %s60_s17 = int_to_ptr.vmem [resolvable:$true] %s59_s17 }
  0x36   :  { %p1410_p11 = scmp.lt.u32.totalorder %s1406_s21, %s1608_s5 }
  0x38   :  { %p1412_p12 = pnand %p1410_p11, %p1407_p10 }
  0x3a   :  { %1415 = shalt.err (!%p1412_p12)
}
  0x3b   :  { %s1416_s1 = scalar_lea.vmem %s60_s17, 1024  ;;  %p1421_p0 = scmp.lt.s32.totalorder %s60_s17, %s60_s17 }
  0x3c   :  { %p1417_p13 = scmp.ne.s32.totalorder %s60_s17, %s1416_s1  ;;  %p1422_p1 = scmp.lt.s32.totalorder %s1416_s1, %s1416_s1 }
  0x3e   :  { %p1423_p2 = por %p1422_p1, %p1421_p0 }
  0x40   :  { %p1424_p3 = pnand %p1423_p2, %p1417_p13 }
  0x42   :  { %1427 = shalt.err (!%p1424_p3)
}
  0x43   :  { %65 = dma.hbm_to_vmem [thread:$0]  %s1608_s5, 1024, %s60_s17, [#allocation9], %s1459_s11, %s1459_s11, %s1460_s12  }
  0x44   :  { %1450 = dma.done.wait [#allocation3], 1024  }
  0x45   :  { %1451 = vsyncadd [#allocation3], 4294966272 }
  0x46   :  { %1452 = dma.done.wait [#allocation6], 9216  }
  0x47   :  { %1453 = vsyncadd [#allocation6], 4294958080 }
  0x48   :  { %1454 = dma.done.wait [#allocation9], 1024  }
  0x49   :  { %1455 = vsyncadd [#allocation9], 4294966272  ;;  %v1258_v0 = vld [vmem:[#allocation5 + $0x40] sm:$0xff]   ;;  %v1262_v4 = vld [vmem:[#allocation5 + $0x48] sm:$0xff]   ;;  %vm1465_vm0 = vmmov 0   ;;  %s1466_s28 = smov [#allocation10]  }
  0x4a   :  { %v1259_v1 = vld [vmem:[#allocation5 + $0xc0] sm:$0xff]   ;;  %1103 = vmatprep.subr.bf16.mxu0 %v1258_v0  ;;  %v1263_v5 = vld [vmem:[#allocation5 + $0xc8] sm:$0xff]   ;;  %v1266_v8 = vld [vmem:[#allocation5 + $0x50] sm:$0xff]   ;;  %s1009_s29 = sshll.u32 %s1466_s28, 4  ;;  %s1010_s29 = int_to_ptr.vmem [resolvable:$true] %s1009_s29 }
  0x4b   :  { %v1260_v2 = vld [vmem:[#allocation5] sm:$0xff]   ;;  %1125 = vmatprep.subr.bf16.mxu1 %v1259_v1  ;;  %v1264_v6 = vld [vmem:[#allocation5 + $0x8] sm:$0xff]   ;;  %v1267_v9 = vld [vmem:[#allocation5 + $0xd0] sm:$0xff]   ;;  %p1433_p5 = scmp.lt.s32.totalorder %s1010_s29, %s1010_s29 }
  0x4c   :  { %v1261_v3 = vld [vmem:[#allocation5 + $0x80] sm:$0xff]   ;;  %1104 = vmatpush3.bf16.msra.mxu0 %v1260_v2  ;;  %v1265_v7 = vld [vmem:[#allocation5 + $0x88] sm:$0xff]   ;;  %v1268_v10 = vld [vmem:[#allocation5 + $0x10] sm:$0xff]  }
  0x4d   :  { %1126 = vmatpush3.bf16.msra.mxu1 %v1261_v3  ;;  %1105 = vmatprep.subr.bf16.mxu0 %v1262_v4  ;;  %v1269_v11 = vld [vmem:[#allocation5 + $0x90] sm:$0xff]   ;;  %v1270_v12 = vld [vmem:[#allocation5 + $0x58] sm:$0xff]   ;;  %v1274_v16 = vld [vmem:[#allocation5 + $0x60] sm:$0xff]  }
  0x4e   :  { %1127 = vmatprep.subr.bf16.mxu1 %v1263_v5  ;;  %v1271_v13 = vld [vmem:[#allocation5 + $0xd8] sm:$0xff]   ;;  %v1275_v17 = vld [vmem:[#allocation5 + $0xe0] sm:$0xff]   ;;  %v1278_v20 = vld [vmem:[#allocation5 + $0x68] sm:$0xff]  }
  0x4f   :  { %v1272_v14 = vld [vmem:[#allocation5 + $0x18] sm:$0xff]   ;;  %v1276_v18 = vld [vmem:[#allocation5 + $0x20] sm:$0xff]   ;;  %v1279_v21 = vld [vmem:[#allocation5 + $0xe8] sm:$0xff]  }
  0x50   :  { %1106 = vmatpush3.bf16.msra.mxu0 %v1264_v6  ;;  %v1273_v15 = vld [vmem:[#allocation5 + $0x98] sm:$0xff]   ;;  %v1277_v19 = vld [vmem:[#allocation5 + $0xa0] sm:$0xff]   ;;  %v1280_v22 = vld [vmem:[#allocation5 + $0x28] sm:$0xff]  }
  0x51   :  { %1128 = vmatpush3.bf16.msra.mxu1 %v1265_v7  ;;  %1107 = vmatprep.subr.bf16.mxu0 %v1266_v8  ;;  %v1281_v23 = vld [vmem:[#allocation5 + $0xa8] sm:$0xff]   ;;  %v1282_v24 = vld [vmem:[#allocation5 + $0x70] sm:$0xff]   ;;  %v1286_v28 = vld [vmem:[#allocation5 + $0x78] sm:$0xff]  }
  0x52   :  { %1129 = vmatprep.subr.bf16.mxu1 %v1267_v9  ;;  %v1283_v25 = vld [vmem:[#allocation5 + $0xf0] sm:$0xff]   ;;  %v1287_v29 = vld [vmem:[#allocation5 + $0xf8] sm:$0xff]   ;;  %v82_v32 = vld [vmem:[#allocation2 + $0x8] sm:$0xff] }
  0x53   :  { %v1284_v26 = vld [vmem:[#allocation5 + $0x30] sm:$0xff]   ;;  %v1288_v30 = vld [vmem:[#allocation5 + $0x38] sm:$0xff]   ;;  %v81_v34 = vld [vmem:[#allocation2] sm:$0xff]  ;;  %v219_v35 = vpack.c.bf16 %v82_v32, %v82_v32 }
  0x54   :  { %1108 = vmatpush3.bf16.msra.mxu0 %v1268_v10  ;;  %v1285_v27 = vld [vmem:[#allocation5 + $0xb0] sm:$0xff]   ;;  %v1289_v31 = vld [vmem:[#allocation5 + $0xb8] sm:$0xff]   ;;  %v218_v37 = vpack.c.bf16 %v81_v34, %v81_v34  ;;  %v1290_v40 = vld [vmem:[#allocation5 + $0x140] sm:$0xff]  }
  0x55   :  { %1130 = vmatpush3.bf16.msra.mxu1 %v1269_v11  ;;  %1109 = vmatprep.subr.bf16.mxu0 %v1270_v12  ;;  %v84_v33 = vld [vmem:[#allocation2 + $0x18] sm:$0xff]  ;;  %v83_v38 = vld [vmem:[#allocation2 + $0x10] sm:$0xff]  ;;  %v1291_v41 = vld [vmem:[#allocation5 + $0x1c0] sm:$0xff]  }
  0x56   :  { %1131 = vmatprep.subr.bf16.mxu1 %v1271_v13  ;;  %v221_v36 = vpack.c.bf16 %v84_v33, %v84_v33  ;;  %v220_v39 = vpack.c.bf16 %v83_v38, %v83_v38  ;;  %648 = vmatprep.mubr.bf16.mxu0 %v219_v35  ;;  %v1292_v42 = vld [vmem:[#allocation5 + $0x100] sm:$0xff]   ;;  %v1294_v44 = vld [vmem:[#allocation5 + $0x148] sm:$0xff]   ;;  %v1298_v48 = vld [vmem:[#allocation5 + $0x150] sm:$0xff]  }
  0x57   :  { %v1293_v43 = vld [vmem:[#allocation5 + $0x180] sm:$0xff]   ;;  %v1295_v45 = vld [vmem:[#allocation5 + $0x1c8] sm:$0xff]   ;;  %v1299_v49 = vld [vmem:[#allocation5 + $0x1d0] sm:$0xff]  }
  0x58   :  { %1110 = vmatpush3.bf16.msra.mxu0 %v1272_v14  ;;  %688 = vmatprep.mubr.bf16.mxu1 %v221_v36  ;;  %v1296_v46 = vld [vmem:[#allocation5 + $0x108] sm:$0xff]   ;;  %v1300_v50 = vld [vmem:[#allocation5 + $0x110] sm:$0xff]   ;;  %v1302_v52 = vld [vmem:[#allocation5 + $0x158] sm:$0xff]  }
  0x59   :  { %1132 = vmatpush3.bf16.msra.mxu1 %v1273_v15  ;;  %1111 = vmatprep.subr.bf16.mxu0 %v1274_v16  ;;  %v1297_v47 = vld [vmem:[#allocation5 + $0x188] sm:$0xff]   ;;  %v1301_v51 = vld [vmem:[#allocation5 + $0x190] sm:$0xff]   ;;  %v1303_v53 = vld [vmem:[#allocation5 + $0x1d8] sm:$0xff]  }
  0x5a   :  { %1133 = vmatprep.subr.bf16.mxu1 %v1275_v17  ;;  %v1304_v54 = vld [vmem:[#allocation5 + $0x118] sm:$0xff]   ;;  %v1306_v56 = vld [vmem:[#allocation5 + $0x160] sm:$0xff]   ;;  %v1310_v60 = vld [vmem:[#allocation5 + $0x168] sm:$0xff]   ;;  %v1464_v17 = vmov 0.0  }
  0x5b   :  { %v1305_v55 = vld [vmem:[#allocation5 + $0x198] sm:$0xff]   ;;  %v1307_v57 = vld [vmem:[#allocation5 + $0x1e0] sm:$0xff]   ;;  %v1311_v61 = vld [vmem:[#allocation5 + $0x1e8] sm:$0xff]  }
  0x5c   :  { %1112 = vmatpush3.bf16.msra.mxu0 %v1276_v18  ;;  %v1308_v58 = vld [vmem:[#allocation5 + $0x120] sm:$0xff]   ;;  %v1312_v62 = vld [vmem:[#allocation5 + $0x128] sm:$0xff]   ;;  %v1314_v0 = vld [vmem:[#allocation5 + $0x170] sm:$0xff]  }
  0x5d   :  { %1134 = vmatpush3.bf16.msra.mxu1 %v1277_v19  ;;  %1113 = vmatprep.subr.bf16.mxu0 %v1278_v20  ;;  %v1309_v59 = vld [vmem:[#allocation5 + $0x1a0] sm:$0xff]   ;;  %v1313_v63 = vld [vmem:[#allocation5 + $0x1a8] sm:$0xff]   ;;  %v1315_v1 = vld [vmem:[#allocation5 + $0x1f0] sm:$0xff]  }
  0x5e   :  { %1135 = vmatprep.subr.bf16.mxu1 %v1279_v21  ;;  %v1316_v2 = vld [vmem:[#allocation5 + $0x130] sm:$0xff]   ;;  %v1318_v4 = vld [vmem:[#allocation5 + $0x178] sm:$0xff]   ;;  %v86_v8 = vld [vmem:[#allocation2 + $0x28] sm:$0xff] }
  0x5f   :  { %v1317_v3 = vld [vmem:[#allocation5 + $0x1b0] sm:$0xff]   ;;  %v1319_v5 = vld [vmem:[#allocation5 + $0x1f8] sm:$0xff]   ;;  %v223_v10 = vpack.c.bf16 %v86_v8, %v86_v8  ;;  %v85_v12 = vld [vmem:[#allocation2 + $0x20] sm:$0xff] }
  0x60   :  { %1114 = vmatpush3.bf16.msra.mxu0 %v1280_v22  ;;  %v1320_v6 = vld [vmem:[#allocation5 + $0x138] sm:$0xff]   ;;  %v87_v13 = vld [vmem:[#allocation2 + $0x30] sm:$0xff]  ;;  %v222_v14 = vpack.c.bf16 %v85_v12, %v85_v12  ;;  %v1322_v16 = vld [vmem:[#allocation7] sm:$0xff]  }
  0x61   :  { %1136 = vmatpush3.bf16.msra.mxu1 %v1281_v23  ;;  %1115 = vmatprep.subr.bf16.mxu0 %v1282_v24  ;;  %v1321_v7 = vld [vmem:[#allocation5 + $0x1b8] sm:$0xff]   ;;  %v224_v15 = vpack.c.bf16 %v87_v13, %v87_v13  ;;  %v1323_v18 = vld [vmem:[#allocation7 + $0x8] sm:$0xff]   ;;  %v1324_v19 = vld [vmem:[#allocation7 + $0x10] sm:$0xff]  }
  0x62   :  { %1137 = vmatprep.subr.bf16.mxu1 %v1283_v25  ;;  %v88_v9 = vld [vmem:[#allocation2 + $0x38] sm:$0xff]  ;;  %v1326_v21 = vld [vmem:[#allocation7 + $0x20] sm:$0xff]   ;;  %v1327_v22 = vld [vmem:[#allocation7 + $0x28] sm:$0xff]  }
  0x63   :  { %v225_v11 = vpack.c.bf16 %v88_v9, %v88_v9  ;;  %v1325_v20 = vld [vmem:[#allocation7 + $0x18] sm:$0xff]   ;;  %v1328_v23 = vld [vmem:[#allocation7 + $0x30] sm:$0xff]   ;;  %v1330_v25 = vld [vmem:[#allocation8] sm:$0xff]  }
  0x64   :  { %1116 = vmatpush3.bf16.msra.mxu0 %v1284_v26  ;;  %v1329_v24 = vld [vmem:[#allocation7 + $0x38] sm:$0xff]   ;;  %v1331_v26 = vld [vmem:[#allocation8 + $0x8] sm:$0xff]  }
  0x65   :  { %1138 = vmatpush3.bf16.msra.mxu1 %v1285_v27  ;;  %1117 = vmatprep.subr.bf16.mxu0 %v1286_v28  ;;  %v1332_v27 = vld [vmem:[#allocation8 + $0x10] sm:$0xff]   ;;  %v1333_v28 = vld [vmem:[#allocation8 + $0x18] sm:$0xff]  }
  0x66   :  { %1139 = vmatprep.subr.bf16.mxu1 %v1287_v29 }
  0x68   :  { %1118 = vmatpush3.bf16.msra.mxu0 %v1288_v30 }
  0x69   :  { %1140 = vmatpush3.bf16.msra.mxu1 %v1289_v31  ;;  %1147 = vmatprep.subr.bf16.mxu0 %v1290_v40  ;;  %v1020_v31 = vld [vmem:[%s1605_s2] ss:$0 sm:$0xff] }
  0x6a   :  { %1169 = vmatprep.subr.bf16.mxu1 %v1291_v41 }
  0x6b   :  { %649 = vmatmul.mubr.bf16.vlgmr.msra.gmra.mrb[0].mxu0 %v218_v37 }
  0x6c   :  { %689 = vmatmul.mubr.bf16.vlgmr.msra.gmra.mrb[0].mxu1 %v220_v39  ;;  %1148 = vmatpush3.bf16.msra.mxu0 %v1292_v42 }
  0x6d   :  { %1170 = vmatpush3.bf16.msra.mxu1 %v1293_v43  ;;  %1149 = vmatprep.subr.bf16.mxu0 %v1294_v44 }
  0x6e   :  { %1171 = vmatprep.subr.bf16.mxu1 %v1295_v45  ;;  %728 = vmatprep.mubr.bf16.mxu0 %v223_v10 }
  0x6f   :  { %768 = vmatprep.mubr.bf16.mxu1 %v225_v11 }
  0x70   :  { %1150 = vmatpush3.bf16.msra.mxu0 %v1296_v46 }
  0x71   :  { %1172 = vmatpush3.bf16.msra.mxu1 %v1297_v47  ;;  %1151 = vmatprep.subr.bf16.mxu0 %v1298_v48 }
  0x72   :  { %1173 = vmatprep.subr.bf16.mxu1 %v1299_v49 }
  0x74   :  { %1152 = vmatpush3.bf16.msra.mxu0 %v1300_v50 }
  0x75   :  { %1174 = vmatpush3.bf16.msra.mxu1 %v1301_v51  ;;  %1153 = vmatprep.subr.bf16.mxu0 %v1302_v52 }
  0x76   :  { %1175 = vmatprep.subr.bf16.mxu1 %v1303_v53 }
  0x78   :  { %1154 = vmatpush3.bf16.msra.mxu0 %v1304_v54 }
  0x79   :  { %1176 = vmatpush3.bf16.msra.mxu1 %v1305_v55  ;;  %1155 = vmatprep.subr.bf16.mxu0 %v1306_v56  ;;  %v1334_v56 = vld [vmem:[#allocation8 + $0x20] sm:$0xff]  }
  0x7a   :  { %1177 = vmatprep.subr.bf16.mxu1 %v1307_v57  ;;  %v1335_v57 = vld [vmem:[#allocation8 + $0x28] sm:$0xff]  }
  0x7c   :  { %1156 = vmatpush3.bf16.msra.mxu0 %v1308_v58  ;;  %v1336_v58 = vld [vmem:[#allocation8 + $0x30] sm:$0xff]  }
  0x7d   :  { %1178 = vmatpush3.bf16.msra.mxu1 %v1309_v59  ;;  %1157 = vmatprep.subr.bf16.mxu0 %v1310_v60  ;;  %v1337_v59 = vld [vmem:[#allocation8 + $0x38] sm:$0xff]   ;;  %v1085_v60 = vld [vmem:[%s1607_s4] ss:$0 sm:$0xff]  ;;  %s1428_s4 = scalar_lea.vmem %s1010_s29, 128 }
  0x7e   :  { %1179 = vmatprep.subr.bf16.mxu1 %v1311_v61  ;;  %p1429_p4 = scmp.ne.s32.totalorder %s1010_s29, %s1428_s4  ;;  %p1434_p6 = scmp.lt.s32.totalorder %s1428_s4, %s1428_s4 }
  0x80   :  { %1158 = vmatpush3.bf16.msra.mxu0 %v1312_v62  ;;  %p1435_p7 = por %p1434_p6, %p1433_p5 }
  0x81   :  { %1180 = vmatpush3.bf16.msra.mxu1 %v1313_v63  ;;  %1159 = vmatprep.subr.bf16.mxu0 %v1314_v0 }
  0x82   :  { %1181 = vmatprep.subr.bf16.mxu1 %v1315_v1  ;;  %p1436_p8 = pnand %p1435_p7, %p1429_p4 }
  0x84   :  { %1160 = vmatpush3.bf16.msra.mxu0 %v1316_v2 }
  0x85   :  { %1182 = vmatpush3.bf16.msra.mxu1 %v1317_v3  ;;  %1161 = vmatprep.subr.bf16.mxu0 %v1318_v4  ;;  %v1094_v4 = vld [vmem:[%s1609_s6] ss:$0 sm:$0xff] }
  0x86   :  { %1183 = vmatprep.subr.bf16.mxu1 %v1319_v5 }
  0x88   :  { %1162 = vmatpush3.bf16.msra.mxu0 %v1320_v6 }
  0x89   :  { %1184 = vmatpush3.bf16.msra.mxu1 %v1321_v7  ;;  %1209 = vmatprep.subr.bf16.mxu0 %v1464_v17 }
  0x8a   :  { %1229 = vmatprep.subr.bf16.mxu1 %v1464_v17 }
  0x8b   :  { %729 = vmatmul.mubr.bf16.vlgmr.msra.gmra.mrb[4].mxu0 %v222_v14 }
  0x8c   :  { %769 = vmatmul.mubr.bf16.vlgmr.msra.gmra.mrb[4].mxu1 %v224_v15  ;;  %1210 = vmatpush3.bf16.msra.mxu0 %v1322_v16 }
  0x8d   :  { %1211 = vmatprep.subr.bf16.mxu0 %v1464_v17  ;;  %1225 = vmatprep.mubr.msk.bf16.mxu0 %vm1465_vm0, %v1464_v17 }
  0x8e   :  { %1245 = vmatprep.mubr.msk.bf16.mxu1 %vm1465_vm0, %v1464_v17  ;;  %1230 = vmatpush3.bf16.msra.mxu1 %v1330_v25 }
  0x8f   :  { %1231 = vmatprep.subr.bf16.mxu1 %v1464_v17 }
  0x90   :  { %1212 = vmatpush3.bf16.msra.mxu0 %v1323_v18 }
  0x91   :  { %1213 = vmatprep.subr.bf16.mxu0 %v1464_v17 }
  0x92   :  { %1232 = vmatpush3.bf16.msra.mxu1 %v1331_v26 }
  0x93   :  { %1233 = vmatprep.subr.bf16.mxu1 %v1464_v17 }
  0x94   :  { %1214 = vmatpush3.bf16.msra.mxu0 %v1324_v19 }
  0x95   :  { %1215 = vmatprep.subr.bf16.mxu0 %v1464_v17 }
  0x96   :  { %1234 = vmatpush3.bf16.msra.mxu1 %v1332_v27 }
  0x97   :  { %1235 = vmatprep.subr.bf16.mxu1 %v1464_v17 }
  0x98   :  { %1216 = vmatpush3.bf16.msra.mxu0 %v1325_v20 }
  0x99   :  { %1217 = vmatprep.subr.bf16.mxu0 %v1464_v17 }
  0x9a   :  { %1236 = vmatpush3.bf16.msra.mxu1 %v1333_v28 }
  0x9b   :  { %1237 = vmatprep.subr.bf16.mxu1 %v1464_v17 }
  0x9c   :  { %1218 = vmatpush3.bf16.msra.mxu0 %v1326_v21 }
  0x9d   :  { %1219 = vmatprep.subr.bf16.mxu0 %v1464_v17 }
  0x9e   :  { %1238 = vmatpush3.bf16.msra.mxu1 %v1334_v56 }
  0x9f   :  { %1239 = vmatprep.subr.bf16.mxu1 %v1464_v17 }
  0xa0   :  { %1220 = vmatpush3.bf16.msra.mxu0 %v1327_v22 }
  0xa1   :  { %1221 = vmatprep.subr.bf16.mxu0 %v1464_v17 }
  0xa2   :  { %1240 = vmatpush3.bf16.msra.mxu1 %v1335_v57 }
  0xa3   :  { %1241 = vmatprep.subr.bf16.mxu1 %v1464_v17 }
  0xa4   :  { %1222 = vmatpush3.bf16.msra.mxu0 %v1328_v23 }
  0xa5   :  { %1223 = vmatprep.subr.bf16.mxu0 %v1464_v17 }
  0xa6   :  { %1242 = vmatpush3.bf16.msra.mxu1 %v1336_v58 }
  0xa7   :  { %1243 = vmatprep.subr.bf16.mxu1 %v1464_v17 }
  0xa8   :  { %1224 = vmatpush3.bf16.msra.mxu0 %v1329_v24 }
  0xaa   :  { %1244 = vmatpush3.bf16.msra.mxu1 %v1337_v59 }
 0x13e   :  { %v1119_v29 = vpop.f32.mrb[0].mxu0 }
 0x13f   :  { %v1141_v30 = vpop.f32.mrb[0].mxu1  ;;  %v1120_v32 = vpop.f32.mrb[1].mxu0 }
 0x140   :  { %v1142_v33 = vpop.f32.mrb[1].mxu1  ;;  %v1121_v34 = vadd.f32 %v1120_v32, %v1119_v29  ;;  %v1122_v36 = vpop.f32.mrb[2].mxu0 }
 0x141   :  { %v1143_v35 = vadd.f32 %v1142_v33, %v1141_v30  ;;  %v1144_v37 = vpop.f32.mrb[2].mxu1  ;;  %v1123_v38 = vpop.f32.mrb[3].mxu0 }
 0x142   :  { %v1145_v39 = vpop.f32.mrb[3].mxu1  ;;  %v651_v40 = vadd.f32 %v1121_v34, %v1020_v31 }
 0x144   :  { %v691_v41 = vadd.f32 %v1143_v35, %v651_v40 }
 0x15e   :  { %v1163_v42 = vpop.f32.mrb[4].mxu0 }
 0x15f   :  { %v1185_v43 = vpop.f32.mrb[4].mxu1  ;;  %v1164_v44 = vpop.f32.mrb[5].mxu0 }
 0x160   :  { %v1165_v45 = vadd.f32 %v1164_v44, %v1163_v42  ;;  %v1186_v46 = vpop.f32.mrb[5].mxu1  ;;  %v1166_v47 = vpop.f32.mrb[6].mxu0 }
 0x161   :  { %v1187_v48 = vadd.f32 %v1186_v46, %v1185_v43  ;;  %v1188_v49 = vpop.f32.mrb[6].mxu1  ;;  %v1167_v50 = vpop.f32.mrb[7].mxu0 }
 0x162   :  { %v731_v51 = vadd.f32 %v1165_v45, %v691_v41  ;;  %v1189_v52 = vpop.f32.mrb[7].mxu1 }
 0x164   :  { %v771_v53 = vadd.f32 %v1187_v48, %v731_v51 }
 0x166   :  { %v776_v54 = vmax.f32 %v771_v53, 0.0 }
 0x168   :  { %v794_v55 = vpack.c.bf16 %v776_v54, %v776_v54 }
 0x16a   :  { %1226 = vmatmul.mubr.bf16.vlgmr.msra.gmra.mrb[8].mxu0 %v794_v55 }
 0x23d   :  { %v883_v61 = vpop.f32.mrb[8].mxu0 }
 0x23e   :  { %v884_v62 = vadd.f32 %v1085_v60, %v883_v61  ;;  %v1227_v63 = vpop.f32.mrb[9].mxu0 }
 0x23f   :  { %v886_v0 = vpop.f32.mrb[10].mxu0 }
 0x240   :  { %1338 = vtanh.f32 %v884_v62  ;;  %v1228_v1 = vpop.f32.mrb[11].mxu0 }
 0x24a   :  { %v1339_v2 = vpop.eup %1338 }
 0x24b   :  { %v907_v3 = vpack.c.bf16 %v1339_v2, %v1339_v2 }
 0x24d   :  { %1246 = vmatmul.mubr.bf16.vlgmr.msra.gmra.mrb[8].mxu1 %v907_v3 }
 0x320   :  { %v996_v5 = vpop.f32.mrb[8].mxu1 }
 0x321   :  { %v997_v6 = vadd.f32 %v1094_v4, %v996_v5  ;;  %v1247_v7 = vpop.f32.mrb[9].mxu1 }
 0x322   :  { %v999_v8 = vpop.f32.mrb[10].mxu1 }
 0x323   :  { %1002 = vst [vmem:[#allocation10] sm:$0xff] %v997_v6  ;;  %v1248_v9 = vpop.f32.mrb[11].mxu1 }
 0x324   :  { %1439 = shalt.err (!%p1436_p8)
}
 0x325   :  { %s1440_s6 = scalar_lea.hbm %s1610_s7, 128 }
 0x326   :  { %p1441_p9 = scmp.ne.s32.totalorder %s1610_s7, %s1440_s6  ;;  %p1444_p10 = scmp.lt.u32.totalorder %s1440_s6, %s1610_s7 }
 0x328   :  { %p1446_p11 = pnand %p1444_p10, %p1441_p9 }
 0x32a   :  { %1449 = shalt.err (!%p1446_p11)
}
 0x32b   :  { %1012 = dma.vmem_to_hbm [thread:$0]  %s1010_s29, 128, %s1610_s7, [#allocation4]  }
 0x32c   :  { %1456 = dma.done.wait [#allocation4], 128  }
 0x32d   :  { %1457 = vsyncadd [#allocation4], 4294967168 }
 0x32e   :  { %1016 = vsyncpa [#allocation3], 1 }
 0x32f   :  { %1017 = vsyncpa [#allocation6], 1 }
 0x330   :  { %1018 = vsyncpa [#allocation9], 1 }
 0x331   :  { %1019 = vsyncpa [#allocation4], 1 }

</bundles_post_ra>
